<compile_context>
chip_gen: v5e
topology: v5e:2x2
jax: 0.10.0
libtpu: 0.0.40
codegen_flags: <defaults>
</compile_context>

<pallas_src>
import functools

import jax
import jax.numpy as jnp
from jax.experimental import pallas as pl
from jax.experimental.pallas import tpu as pltpu


D_IN, D_H1, D_H2, D_OUT = 256, 175, 120, 6
# Lane-aligned (multiple-of-128) padded hidden sizes. Zero padding is exact:
# tanh(0)=0, relu(0)=0 and the padded weight rows/cols are zero.
H1_P, H2_P = 256, 128


def _round_up(x, m):
    return ((x + m - 1) // m) * m


def _pad2(a, shape):
    """Zero-pad a 2-D array up to `shape`."""
    return jnp.pad(a, ((0, shape[0] - a.shape[0]), (0, shape[1] - a.shape[1])))


def _physical_vmem_bytes():
    """Physical VMEM of the local TPU generation (conservative fallback)."""
    try:
        info = pltpu.get_tpu_info()
        for attr in ("vmem_capacity_bytes", "vmem_size_bytes", "vmem_bytes"):
            v = getattr(info, attr, None)
            if v:
                return int(v)
    except Exception:
        pass
    return 64 << 20  # v7x-sized: safe lower bound for every generation


def _default_act_dtype(compute_dtype):
    """bf16 tanh on v6e/v7x (bf16 EUP), f32 on v5e (no bf16 EUP) / f32 path."""
    if jnp.dtype(compute_dtype) == jnp.dtype(jnp.float32):
        return jnp.float32
    try:
        kind = jax.devices()[0].device_kind.lower()
        if "v5 lite" in kind or "v5e" in kind or "v5litepod" in kind:
            return jnp.float32
    except Exception:
        pass
    return jnp.bfloat16


def _mlp_kernel(x_ref, w1_ref, b1_ref, w2_ref, b2_ref, w3_ref, b3_ref, o_ref,
                *, compute_dtype, act_dtype):
    # Hidden layer 1: Linear -> Tanh -> ReLU     (bm,256) @ (256,256)
    x = x_ref[...].astype(compute_dtype)
    h = jnp.dot(x, w1_ref[...].astype(compute_dtype),
                preferred_element_type=jnp.float32)
    h = h + b1_ref[...]                                   # f32 bias add
    h = jnp.maximum(jnp.tanh(h.astype(act_dtype)), 0.0).astype(compute_dtype)

    # Hidden layer 2: Linear -> Tanh -> ReLU     (bm,256) @ (256,128)
    h = jnp.dot(h, w2_ref[...].astype(compute_dtype),
                preferred_element_type=jnp.float32)
    h = h + b2_ref[...]
    h = jnp.maximum(jnp.tanh(h.astype(act_dtype)), 0.0).astype(compute_dtype)

    # Output layer: Linear (no activation)       (bm,128) @ (128,6)
    o = jnp.dot(h, w3_ref[...].astype(compute_dtype),
                preferred_element_type=jnp.float32)
    o_ref[...] = (o + b3_ref[...]).astype(o_ref.dtype)


def prepare_params(params, dtype=jnp.bfloat16):
    """Pad hidden dims to lane-aligned sizes and cast weights ONCE (outside
    the per-call forward). Biases stay f32 (they add into the f32 accumulator)."""
    w1, b1, w2, b2, w3, b3 = params
    w1p = _pad2(w1, (D_IN, H1_P)).astype(dtype)
    b1p = _pad2(b1.reshape(1, -1), (1, H1_P)).astype(jnp.float32)
    w2p = _pad2(w2, (H1_P, H2_P)).astype(dtype)
    b2p = _pad2(b2.reshape(1, -1), (1, H2_P)).astype(jnp.float32)
    w3p = _pad2(w3, (H2_P, D_OUT)).astype(dtype)
    b3p = b3.reshape(1, -1).astype(jnp.float32)
    return (w1p, b1p, w2p, b2p, w3p, b3p)


@functools.partial(jax.jit, static_argnames=("bm", "compute_dtype", "act_dtype"))
def _forward_impl(x, prepared, *, bm, compute_dtype, act_dtype):
    w1p, b1p, w2p, b2p, w3p, b3p = prepared
    B, d_in = x.shape
    assert d_in == D_IN

    # ---- batch tiling (no wrapper-side padding of x) -------------------------
    if B <= 8:
        bm_eff = B                                   # single full-batch block
    else:
        bm_eff = _round_up(min(bm, B), 8)
        # Keep >= 2 grid steps so the "parallel" batch axis can shard across
        # the two v7x TensorCores (harmless on 1-TC chips).
        two_step_cap = _round_up(pl.cdiv(B, 2), 8)
        bm_eff = max(8, min(bm_eff, two_step_cap))

    # ---- VMEM budget (lane-padded out bufs + internal-scratch headroom) -----
    x_isz = jnp.dtype(x.dtype).itemsize
    w_isz = jnp.dtype(w1p.dtype).itemsize

    def vmem_needed(m):
        return (2 * m * D_IN * x_isz                              # x (2 bufs)
                + 2 * m * 128 * 4                                 # out (2 bufs, lane-padded)
                + 2 * (D_IN * H1_P + H1_P * H2_P + H2_P * 128) * w_isz  # weights (2 bufs)
                + 2 * (H1_P + H2_P + 128) * 4                     # biases
                + m * (H1_P + H2_P) * (4 + 2)                     # f32 acts + bf16 copies
                + (4 << 20))                                      # Mosaic internal scratch

    vmem_budget = (_physical_vmem_bytes() * 3) // 4   # ~48 MiB v7x, ~96 MiB v5e/v6e
    while bm_eff > 8 and vmem_needed(bm_eff) > vmem_budget:
        bm_eff = max(8, _round_up(bm_eff // 2, 8))
    vmem_limit = int(min(vmem_budget, max(vmem_needed(bm_eff) + (8 << 20), 32 << 20)))

    grid = (pl.cdiv(B, bm_eff),)   # trailing block may be ragged; OOB rows are
                                   # row-independent and masked on writeback.
    kernel = functools.partial(_mlp_kernel,
                               compute_dtype=compute_dtype, act_dtype=act_dtype)
    out = pl.pallas_call(
        kernel,
        out_shape=jax.ShapeDtypeStruct((B, D_OUT), jnp.float32),
        grid_spec=pl.GridSpec(
            grid=grid,
            in_specs=[
                pl.BlockSpec((bm_eff, D_IN), lambda i: (i, 0)),   # x tile (streamed)
                pl.BlockSpec((D_IN, H1_P), lambda i: (0, 0)),     # W1 (resident)
                pl.BlockSpec((1, H1_P), lambda i: (0, 0)),        # b1
                pl.BlockSpec((H1_P, H2_P), lambda i: (0, 0)),     # W2 (resident)
                pl.BlockSpec((1, H2_P), lambda i: (0, 0)),        # b2
                pl.BlockSpec((H2_P, D_OUT), lambda i: (0, 0)),    # W3 (resident)
                pl.BlockSpec((1, D_OUT), lambda i: (0, 0)),       # b3
            ],
            out_specs=pl.BlockSpec((bm_eff, D_OUT), lambda i: (i, 0)),
        ),
        compiler_params=pltpu.CompilerParams(
            dimension_semantics=("parallel",),
            vmem_limit_bytes=vmem_limit,
        ),
    )(x, w1p, b1p, w2p, b2p, w3p, b3p)
    return out


def predictor_forward(x, prepared_params, *, bm=4096,
                      compute_dtype=jnp.bfloat16, act_dtype=None):
    """x: (B, 256) -> (B, 6) float32 for any B >= 1.

    Default perf path: bf16 matmul inputs / bf16 tanh (f32 accumulation).
    For bit-tight f32 results, pass compute_dtype=jnp.float32 with params
    prepared via prepare_params(params, jnp.float32).
    """
    if act_dtype is None:
        act_dtype = _default_act_dtype(compute_dtype)
    return _forward_impl(x, prepared_params, bm=bm,
                         compute_dtype=compute_dtype, act_dtype=act_dtype)


def init_params(key):
    """torch.nn.Linear-style init: U(-1/sqrt(fan_in), 1/sqrt(fan_in)).
    Weights returned in (in, out) layout (transposed vs. PyTorch storage)."""
    ks = jax.random.split(key, 6)

    def linear(kw, kb, fan_in, fan_out):
        bound = 1.0 / jnp.sqrt(jnp.float32(fan_in))
        w = jax.random.uniform(kw, (fan_in, fan_out), jnp.float32, -bound, bound)
        b = jax.random.uniform(kb, (1, fan_out), jnp.float32, -bound, bound)
        return w, b

    w1, b1 = linear(ks[0], ks[1], D_IN, D_H1)
    w2, b2 = linear(ks[2], ks[3], D_H1, D_H2)
    w3, b3 = linear(ks[4], ks[5], D_H2, D_OUT)
    return (w1, b1, w2, b2, w3, b3)


def reference_forward(x, params):
    """Pure-JAX reference matching the PyTorch forward pass exactly."""
    w1, b1, w2, b2, w3, b3 = params
    h = jnp.maximum(jnp.tanh(x @ w1 + b1), 0.0)
    h = jnp.maximum(jnp.tanh(h @ w2 + b2), 0.0)
    return h @ w3 + b3


if __name__ == "__main__":
    key = jax.random.PRNGKey(0)
    k_param, k_x1, k_x2, k_x3 = jax.random.split(key, 4)
    params = init_params(k_param)

    # ---- exact f32 path (tight tolerance) -----------------------------------
    prep_f32 = prepare_params(params, jnp.float32)

    # Test 1: B not a multiple of the tile -> exercises the ragged trailing block.
    B1 = 10
    x1 = jax.random.normal(k_x1, (B1, D_IN), jnp.float32)
    out1 = jax.block_until_ready(
        predictor_forward(x1, prep_f32, compute_dtype=jnp.float32))
    ref1 = reference_forward(x1, params)
    assert out1.shape == (B1, D_OUT), out1.shape
    assert jnp.allclose(out1, ref1, atol=1e-5, rtol=1e-5), "f32 mismatch (B=10)"

    # Test 2: multi-step grid (bm=16 -> 3 grid steps), exact f32 path.
    B2 = 48
    x2 = jax.random.normal(k_x2, (B2, D_IN), jnp.float32)
    out2 = jax.block_until_ready(
        predictor_forward(x2, prep_f32, bm=16, compute_dtype=jnp.float32))
    ref2 = reference_forward(x2, params)
    assert out2.shape == (B2, D_OUT), out2.shape
    assert jnp.allclose(out2, ref2, atol=1e-5, rtol=1e-5), "f32 mismatch (B=48)"

    # ---- default perf path (bf16 matmuls/tanh, f32 accumulation) ------------
    prep_bf16 = prepare_params(params)          # bf16 weights
    B3 = 300                                    # B % bm != 0, 2 ragged-ish tiles
    x3 = jax.random.normal(k_x3, (B3, D_IN), jnp.float32)
    out3 = jax.block_until_ready(predictor_forward(x3, prep_bf16))
    ref3 = reference_forward(x3, params)
    assert out3.shape == (B3, D_OUT), out3.shape
    max_err = float(jnp.max(jnp.abs(out3 - ref3)))
    assert max_err < 5e-2, f"bf16 path max abs err too large: {max_err}"

    print("KERNEL_OK")
</pallas_src>

<mosaic_0001>
module attributes {stable_mosaic.version = 11 : i64} {
  func.func @_mlp_kernel(%arg0: i32, %arg1: memref<8x256xf32, #tpu.memory_space<vmem>>, %arg2: memref<256x256xf32, #tpu.memory_space<vmem>>, %arg3: memref<1x256xf32, #tpu.memory_space<vmem>>, %arg4: memref<256x128xf32, #tpu.memory_space<vmem>>, %arg5: memref<1x128xf32, #tpu.memory_space<vmem>>, %arg6: memref<128x6xf32, #tpu.memory_space<vmem>>, %arg7: memref<1x6xf32, #tpu.memory_space<vmem>>, %arg8: memref<8x6xf32, #tpu.memory_space<vmem>>) attributes {dimension_semantics = [#tpu.dimension_semantics<parallel>], iteration_bounds = array<i64: 2>, scalar_prefetch = 0 : i64, scratch_operands = 0 : i64, tpu.core_type = #tpu.core_type<tc>, window_params = [{transform_indices = @transform_0, window_bounds = array<i64: 8, 256>}, {pipeline_mode = #tpu.pipeline_mode<synchronous>, transform_indices = @transform_1, window_bounds = array<i64: 256, 256>}, {pipeline_mode = #tpu.pipeline_mode<synchronous>, transform_indices = @transform_2, window_bounds = array<i64: 1, 256>}, {pipeline_mode = #tpu.pipeline_mode<synchronous>, transform_indices = @transform_3, window_bounds = array<i64: 256, 128>}, {pipeline_mode = #tpu.pipeline_mode<synchronous>, transform_indices = @transform_4, window_bounds = array<i64: 1, 128>}, {pipeline_mode = #tpu.pipeline_mode<synchronous>, transform_indices = @transform_5, window_bounds = array<i64: 128, 6>}, {pipeline_mode = #tpu.pipeline_mode<synchronous>, transform_indices = @transform_6, window_bounds = array<i64: 1, 6>}, {transform_indices = @transform_7, window_bounds = array<i64: 8, 6>}]} {
    %c0 = arith.constant 0 : index
    %c0_0 = arith.constant 0 : index
    %0 = vector.load %arg1[%c0, %c0_0] : memref<8x256xf32, #tpu.memory_space<vmem>>, vector<8x256xf32>
    %c0_1 = arith.constant 0 : index
    %c0_2 = arith.constant 0 : index
    %1 = vector.load %arg2[%c0_1, %c0_2] : memref<256x256xf32, #tpu.memory_space<vmem>>, vector<256x256xf32>
    %cst = arith.constant dense<0.000000e+00> : vector<8x256xf32>
    %2 = tpu.matmul %0, %1, %cst {dimension_numbers = #tpu.dot_dimension_numbers<[1], [0], [0], [1], [0, 0, 1, 1], [], []>} : vector<8x256xf32>, vector<256x256xf32>, vector<8x256xf32> -> vector<8x256xf32>
    %c0_3 = arith.constant 0 : index
    %c0_4 = arith.constant 0 : index
    %3 = vector.load %arg3[%c0_3, %c0_4] : memref<1x256xf32, #tpu.memory_space<vmem>>, vector<1x256xf32>
    %4 = vector.broadcast %3 : vector<1x256xf32> to vector<8x256xf32>
    %5 = arith.addf %2, %4 : vector<8x256xf32>
    %6 = math.tanh %5 : vector<8x256xf32>
    %cst_5 = arith.constant 0.000000e+00 : f32
    %7 = vector.broadcast %cst_5 : f32 to vector<8x256xf32>
    %8 = arith.maximumf %6, %7 : vector<8x256xf32>
    %c0_6 = arith.constant 0 : index
    %c0_7 = arith.constant 0 : index
    %9 = vector.load %arg4[%c0_6, %c0_7] : memref<256x128xf32, #tpu.memory_space<vmem>>, vector<256x128xf32>
    %cst_8 = arith.constant dense<0.000000e+00> : vector<8x128xf32>
    %10 = tpu.matmul %8, %9, %cst_8 {dimension_numbers = #tpu.dot_dimension_numbers<[1], [0], [0], [1], [0, 0, 1, 1], [], []>} : vector<8x256xf32>, vector<256x128xf32>, vector<8x128xf32> -> vector<8x128xf32>
    %c0_9 = arith.constant 0 : index
    %c0_10 = arith.constant 0 : index
    %11 = vector.load %arg5[%c0_9, %c0_10] : memref<1x128xf32, #tpu.memory_space<vmem>>, vector<1x128xf32>
    %12 = vector.broadcast %11 : vector<1x128xf32> to vector<8x128xf32>
    %13 = arith.addf %10, %12 : vector<8x128xf32>
    %14 = math.tanh %13 : vector<8x128xf32>
    %cst_11 = arith.constant 0.000000e+00 : f32
    %15 = vector.broadcast %cst_11 : f32 to vector<8x128xf32>
    %16 = arith.maximumf %14, %15 : vector<8x128xf32>
    %c0_12 = arith.constant 0 : index
    %c0_13 = arith.constant 0 : index
    %17 = vector.load %arg6[%c0_12, %c0_13] : memref<128x6xf32, #tpu.memory_space<vmem>>, vector<128x6xf32>
    %cst_14 = arith.constant dense<0.000000e+00> : vector<8x6xf32>
    %18 = tpu.matmul %16, %17, %cst_14 {dimension_numbers = #tpu.dot_dimension_numbers<[1], [0], [0], [1], [0, 0, 1, 1], [], []>} : vector<8x128xf32>, vector<128x6xf32>, vector<8x6xf32> -> vector<8x6xf32>
    %c0_15 = arith.constant 0 : index
    %c0_16 = arith.constant 0 : index
    %19 = vector.load %arg7[%c0_15, %c0_16] : memref<1x6xf32, #tpu.memory_space<vmem>>, vector<1x6xf32>
    %20 = vector.broadcast %19 : vector<1x6xf32> to vector<8x6xf32>
    %21 = arith.addf %18, %20 : vector<8x6xf32>
    %c0_17 = arith.constant 0 : index
    %c0_18 = arith.constant 0 : index
    %22 = vector.load %arg8[%c0_17, %c0_18] : memref<8x6xf32, #tpu.memory_space<vmem>>, vector<8x6xf32>
    tpu.vector_store %arg8[%c0_17, %c0_18], %21 {strides = array<i32>} : memref<8x6xf32, #tpu.memory_space<vmem>>, vector<8x6xf32>,
    return
  }
  func.func @transform_0(%arg0: i32) -> (i32, i32) {
    %c0_i32 = arith.constant 0 : i32
    %c0_i32_0 = arith.constant 0 : i32
    return %arg0, %c0_i32 : i32, i32
  }
  func.func @transform_1(%arg0: i32) -> (i32, i32) {
    %c0_i32 = arith.constant 0 : i32
    %c0_i32_0 = arith.constant 0 : i32
    %c0_i32_1 = arith.constant 0 : i32
    return %c0_i32, %c0_i32_0 : i32, i32
  }
  func.func @transform_2(%arg0: i32) -> (i32, i32) {
    %c0_i32 = arith.constant 0 : i32
    %c0_i32_0 = arith.constant 0 : i32
    %c0_i32_1 = arith.constant 0 : i32
    return %c0_i32, %c0_i32_0 : i32, i32
  }
  func.func @transform_3(%arg0: i32) -> (i32, i32) {
    %c0_i32 = arith.constant 0 : i32
    %c0_i32_0 = arith.constant 0 : i32
    %c0_i32_1 = arith.constant 0 : i32
    return %c0_i32, %c0_i32_0 : i32, i32
  }
  func.func @transform_4(%arg0: i32) -> (i32, i32) {
    %c0_i32 = arith.constant 0 : i32
    %c0_i32_0 = arith.constant 0 : i32
    %c0_i32_1 = arith.constant 0 : i32
    return %c0_i32, %c0_i32_0 : i32, i32
  }
  func.func @transform_5(%arg0: i32) -> (i32, i32) {
    %c0_i32 = arith.constant 0 : i32
    %c0_i32_0 = arith.constant 0 : i32
    %c0_i32_1 = arith.constant 0 : i32
    return %c0_i32, %c0_i32_0 : i32, i32
  }
  func.func @transform_6(%arg0: i32) -> (i32, i32) {
    %c0_i32 = arith.constant 0 : i32
    %c0_i32_0 = arith.constant 0 : i32
    %c0_i32_1 = arith.constant 0 : i32
    return %c0_i32, %c0_i32_0 : i32, i32
  }
  func.func @transform_7(%arg0: i32) -> (i32, i32) {
    %c0_i32 = arith.constant 0 : i32
    %c0_i32_0 = arith.constant 0 : i32
    return %arg0, %c0_i32 : i32, i32
  }
}

</mosaic_0001>

<bundles_post_ra>
// kernel: _forward_impl.1
= control target key start
LH: loop header
LB: loop body
LE: loop exit
PB: predicated region body
PF: predicated region fallthrough
CT: control target
= control target key end

     0   :  { %12 = vsyncpa [#allocation3], 0  ;;  %s949_s0 = inlined_call_operand.vmem [shape: f32[10,256], index: 0, kind: input, shape index: {}]   ;;  %s950_s1 = inlined_call_operand.hbm [shape: f32[256,256], index: 1, kind: input, shape index: {}]   ;;  %s951_s2 = inlined_call_operand.vmem [shape: f32[1,256], index: 2, kind: input, shape index: {}]   ;;  %s952_s3 = inlined_call_operand.hbm [shape: f32[256,128], index: 3, kind: input, shape index: {}]   ;;  %s953_s4 = inlined_call_operand.vmem [shape: f32[1,128], index: 4, kind: input, shape index: {}]   ;;  %s954_s5 = inlined_call_operand.vmem [shape: f32[128,6], index: 5, kind: input, shape index: {}]   ;;  %s955_s6 = inlined_call_operand.vmem [shape: f32[1,6], index: 6, kind: input, shape index: {}]   ;;  %s956_s7 = inlined_call_operand.vmem [shape: f32[10,6], index: 7, kind: output, shape index: {}]  }
   0x1   :  { %13 = vsyncpa [#allocation5], 0  ;;  %s840_s24 = smov 0  }
   0x2 LB: > { %s213_s27 = sshll.u32 %s950_s1, 4  ;;  %s849_s28 = sadd.s32 4294967295, %s792_s24   ;;  %s792_s24 = sphi %s840_s24, %s19_s24   ;;  %s214_s27 = int_to_ptr.hbm [resolvable:$true] %s213_s27 }
   0x3   : > { %p664_p0 = scmp.ge.s32.totalorder %s792_s24, 1  ;;  %p202_p1 = scmp.lt.s32.totalorder %s792_s24, 3 }
   0x4   : > { %p692_p2 = scmp.eq.s32.totalorder %s849_s28, 0  ;;  %s794_s30 = smov [#allocation2]  }
   0x5   : > { %p854_p3 = pnand %p664_p0, %p202_p1  ;;  %s215_s8 = sshll.u32 %s794_s30, 4  ;;  %s216_s8 = int_to_ptr.vmem [resolvable:$true] %s215_s8 }
   0x6   : > { %s230_s11 = sshll.u32 %s952_s3, 4  ;;  %s795_s12 = smov [#allocation4]   ;;  %s231_s11 = int_to_ptr.hbm [resolvable:$true] %s230_s11 }
   0x7   : > { %p685_p4 = pneg %p854_p3  ;;  %s232_s13 = sshll.u32 %s795_s12, 4  ;;  %s233_s13 = int_to_ptr.vmem [resolvable:$true] %s232_s13 }
   0x8   : > { %s796_s14 = smov 256   ;;  %s797_s15 = smov 16  }
   0x9   : > { %p686_p5 = pnand %p692_p2, %p685_p4  ;;  %s798_s16 = smov 128  }
   0xa   : > { %s799_s17 = smov 8   ;;  %265 = sbr.rel (%p854_p3) target bundleno = 467 (0x1d3), region = 48 }
   0xb   : > { %688 = dma.hbm_to_vmem [thread:$0]  (!%p686_p5), %s214_s27, 8192, %s216_s8, [#allocation3], %s796_s14, %s796_s14, %s797_s15  }
   0xc   : > { %691 = dma.hbm_to_vmem [thread:$0]  (!%p686_p5), %s231_s11, 4096, %s233_s13, [#allocation5], %s798_s16, %s798_s16, %s799_s17  }
   0xf   : > { %783 = dma.done.wait (%p692_p2), [#allocation3], 8192  }
  0x10   : > { %785 = vsyncadd (%p692_p2), [#allocation3], 4294959104 }
  0x11   : > { %787 = dma.done.wait (%p692_p2), [#allocation5], 4096  }
  0x12   : > { %789 = vsyncadd (%p692_p2), [#allocation5], 4294963200  ;;  %v344_v0 = vld [vmem:[#allocation2 + $0xf8] sm:$0xff]  ;;  %v342_v1 = vld [vmem:[#allocation2 + $0xe8] sm:$0xff]  ;;  %p302_p6 = scmp.lt.s32.totalorder %s849_s28, 1  ;;  %vm585_vm0 = vcmask 48128  }
  0x13   : > { %v376_v2 = vld [vmem:[#allocation2 + $0x1f8] sm:$0xff]  ;;  %423 = vmatpush.msra.mxu2 %v344_v0  ;;  %v343_v3 = vld [vmem:[#allocation2 + $0xf0] sm:$0xff]  ;;  %v374_v4 = vld [vmem:[#allocation2 + $0x1e8] sm:$0xff] }
  0x14   : > { %443 = vmatpush.msra.mxu3 %v376_v2  ;;  %383 = vmatpush.msra.mxu0 %v343_v3  ;;  %v340_v5 = vld [vmem:[#allocation2 + $0xd8] sm:$0xff]  ;;  %v341_v6 = vld [vmem:[#allocation2 + $0xe0] sm:$0xff]  ;;  %v375_v7 = vld [vmem:[#allocation2 + $0x1f0] sm:$0xff]  ;;  %s959_s28 = smov (!%p302_p6, %s849_s28), 1 }
  0x15   : > { %424 = vmatpush.msra.mxu2 %v342_v1  ;;  %v372_v8 = vld [vmem:[#allocation2 + $0x1d8] sm:$0xff]  ;;  %v339_v9 = vld [vmem:[#allocation2 + $0xd0] sm:$0xff]  ;;  %v373_v10 = vld [vmem:[#allocation2 + $0x1e0] sm:$0xff]  ;;  %403 = vmatpush.msra.mxu1 %v375_v7  ;;  %s676_s18 = sshll.u32 %s959_s28, 4  ;;  %s673_s16 = sshll.u32 %s959_s28, 3 }
  0x16   : > { %444 = vmatpush.msra.mxu3 %v374_v4  ;;  %384 = vmatpush.msra.mxu0 %v341_v6  ;;  %v338_v11 = vld [vmem:[#allocation2 + $0xc8] sm:$0xff]  ;;  %v337_v13 = vld [vmem:[#allocation2 + $0xc0] sm:$0xff]  ;;  %v371_v14 = vld [vmem:[#allocation2 + $0x1d0] sm:$0xff]  ;;  %s306_s21 = scalar_lea.vmem %s949_s0, %s676_s18 }
  0x17   : > { %v370_v12 = vld [vmem:[#allocation2 + $0x1c8] sm:$0xff]  ;;  %425 = vmatpush.msra.mxu2 %v340_v5  ;;  %404 = vmatpush.msra.mxu1 %v373_v10  ;;  %v336_v15 = vld [vmem:[#allocation2 + $0xb8] sm:$0xff]  ;;  %v335_v17 = vld [vmem:[#allocation2 + $0xb0] sm:$0xff] }
  0x18   : > { %445 = vmatpush.msra.mxu3 %v372_v8  ;;  %385 = vmatpush.msra.mxu0 %v339_v9  ;;  %v368_v16 = vld [vmem:[#allocation2 + $0x1b8] sm:$0xff]  ;;  %v369_v18 = vld [vmem:[#allocation2 + $0x1c0] sm:$0xff]  ;;  %v334_v19 = vld [vmem:[#allocation2 + $0xa8] sm:$0xff] }
  0x19   : > { %426 = vmatpush.msra.mxu2 %v338_v11  ;;  %405 = vmatpush.msra.mxu1 %v371_v14  ;;  %v366_v20 = vld [vmem:[#allocation2 + $0x1a8] sm:$0xff]  ;;  %v333_v21 = vld [vmem:[#allocation2 + $0xa0] sm:$0xff]  ;;  %v367_v22 = vld [vmem:[#allocation2 + $0x1b0] sm:$0xff] }
  0x1a   : > { %446 = vmatpush.msra.mxu3 %v370_v12  ;;  %386 = vmatpush.msra.mxu0 %v337_v13  ;;  %v332_v23 = vld [vmem:[#allocation2 + $0x98] sm:$0xff]  ;;  %v331_v25 = vld [vmem:[#allocation2 + $0x90] sm:$0xff]  ;;  %v365_v26 = vld [vmem:[#allocation2 + $0x1a0] sm:$0xff] }
  0x1b   : > { %427 = vmatpush.msra.mxu2 %v336_v15  ;;  %406 = vmatpush.msra.mxu1 %v369_v18  ;;  %v364_v24 = vld [vmem:[#allocation2 + $0x198] sm:$0xff]  ;;  %v330_v27 = vld [vmem:[#allocation2 + $0x88] sm:$0xff]  ;;  %v329_v29 = vld [vmem:[#allocation2 + $0x80] sm:$0xff] }
  0x1c   : > { %447 = vmatpush.msra.mxu3 %v368_v16  ;;  %387 = vmatpush.msra.mxu0 %v335_v17  ;;  %v362_v28 = vld [vmem:[#allocation2 + $0x188] sm:$0xff]  ;;  %v363_v30 = vld [vmem:[#allocation2 + $0x190] sm:$0xff]  ;;  %v328_v31 = vld [vmem:[#allocation2 + $0x78] sm:$0xff] }
  0x1d   : > { %428 = vmatpush.msra.mxu2 %v334_v19  ;;  %407 = vmatpush.msra.mxu1 %v367_v22  ;;  %v360_v32 = vld [vmem:[#allocation2 + $0x178] sm:$0xff]  ;;  %v327_v33 = vld [vmem:[#allocation2 + $0x70] sm:$0xff]  ;;  %v361_v34 = vld [vmem:[#allocation2 + $0x180] sm:$0xff] }
  0x1e   : > { %448 = vmatpush.msra.mxu3 %v366_v20  ;;  %388 = vmatpush.msra.mxu0 %v333_v21  ;;  %v326_v35 = vld [vmem:[#allocation2 + $0x68] sm:$0xff]  ;;  %v325_v37 = vld [vmem:[#allocation2 + $0x60] sm:$0xff]  ;;  %v359_v38 = vld [vmem:[#allocation2 + $0x170] sm:$0xff] }
  0x1f   : > { %429 = vmatpush.msra.mxu2 %v332_v23  ;;  %408 = vmatpush.msra.mxu1 %v365_v26  ;;  %v358_v36 = vld [vmem:[#allocation2 + $0x168] sm:$0xff]  ;;  %v324_v39 = vld [vmem:[#allocation2 + $0x58] sm:$0xff]  ;;  %v323_v41 = vld [vmem:[#allocation2 + $0x50] sm:$0xff] }
  0x20   : > { %449 = vmatpush.msra.mxu3 %v364_v24  ;;  %389 = vmatpush.msra.mxu0 %v331_v25  ;;  %v356_v40 = vld [vmem:[#allocation2 + $0x158] sm:$0xff]  ;;  %v357_v42 = vld [vmem:[#allocation2 + $0x160] sm:$0xff]  ;;  %v322_v43 = vld [vmem:[#allocation2 + $0x48] sm:$0xff] }
  0x21   : > { %430 = vmatpush.msra.mxu2 %v330_v27  ;;  %409 = vmatpush.msra.mxu1 %v363_v30  ;;  %v354_v44 = vld [vmem:[#allocation2 + $0x148] sm:$0xff]  ;;  %v321_v45 = vld [vmem:[#allocation2 + $0x40] sm:$0xff]  ;;  %v355_v46 = vld [vmem:[#allocation2 + $0x150] sm:$0xff] }
  0x22   : > { %450 = vmatpush.msra.mxu3 %v362_v28  ;;  %390 = vmatpush.msra.mxu0 %v329_v29  ;;  %v320_v47 = vld [vmem:[#allocation2 + $0x38] sm:$0xff]  ;;  %v319_v49 = vld [vmem:[#allocation2 + $0x30] sm:$0xff]  ;;  %v353_v50 = vld [vmem:[#allocation2 + $0x140] sm:$0xff] }
  0x23   : > { %431 = vmatpush.msra.mxu2 %v328_v31  ;;  %410 = vmatpush.msra.mxu1 %v361_v34  ;;  %v352_v48 = vld [vmem:[#allocation2 + $0x138] sm:$0xff]  ;;  %v318_v51 = vld [vmem:[#allocation2 + $0x28] sm:$0xff]  ;;  %v317_v53 = vld [vmem:[#allocation2 + $0x20] sm:$0xff] }
  0x24   : > { %451 = vmatpush.msra.mxu3 %v360_v32  ;;  %391 = vmatpush.msra.mxu0 %v327_v33  ;;  %v350_v52 = vld [vmem:[#allocation2 + $0x128] sm:$0xff]  ;;  %v351_v54 = vld [vmem:[#allocation2 + $0x130] sm:$0xff]  ;;  %v316_v55 = vld [vmem:[#allocation2 + $0x18] sm:$0xff] }
  0x25   : > { %432 = vmatpush.msra.mxu2 %v326_v35  ;;  %411 = vmatpush.msra.mxu1 %v359_v38  ;;  %v348_v56 = vld [vmem:[#allocation2 + $0x118] sm:$0xff]  ;;  %v314_v57 = vld [vmem:[#allocation2 + $0x8] sm:$0xff]  ;;  %v315_v58 = vld [vmem:[#allocation2 + $0x10] sm:$0xff] }
  0x26   : > { %452 = vmatpush.msra.mxu3 %v358_v36  ;;  %392 = vmatpush.msra.mxu0 %v325_v37  ;;  %v349_v59 = vld [vmem:[#allocation2 + $0x120] sm:$0xff]  ;;  %v346_v60 = vld [vmem:[#allocation2 + $0x108] sm:$0xff]  ;;  %v347_v0 = vld [vmem:[#allocation2 + $0x110] sm:$0xff] }
  0x27   : > { %433 = vmatpush.msra.mxu2 %v324_v39  ;;  %412 = vmatpush.msra.mxu1 %v357_v42  ;;  %v311_v61 = vld [vmem:[%s306_s21] sm:$0xff]  ;;  %v312_v62 = vld [vmem:[%s306_s21 + $0x8] sm:$0xff]  ;;  %v482_v2 = vld [vmem:[#allocation4 + $0x78] sm:$0xff]  ;;  %s310_s21 = scalar_lea.vmem %s956_s7, %s673_s16 }
  0x28   : > { %453 = vmatpush.msra.mxu3 %v356_v40  ;;  %393 = vmatpush.msra.mxu0 %v323_v41  ;;  %v313_v63 = vld [vmem:[#allocation2] sm:$0xff]  ;;  %v481_v3 = vld [vmem:[#allocation4 + $0x70] sm:$0xff]  ;;  %v498_v4 = vld [vmem:[#allocation4 + $0xf8] sm:$0xff] }
  0x29   : > { %434 = vmatpush.msra.mxu2 %v322_v43  ;;  %413 = vmatpush.msra.mxu1 %v355_v46  ;;  %v345_v1 = vld [vmem:[#allocation2 + $0x100] sm:$0xff]  ;;  %v480_v5 = vld [vmem:[#allocation4 + $0x68] sm:$0xff]  ;;  %v497_v6 = vld [vmem:[#allocation4 + $0xf0] sm:$0xff] }
  0x2a   : > { %454 = vmatpush.msra.mxu3 %v354_v44  ;;  %394 = vmatpush.msra.mxu0 %v321_v45  ;;  %v479_v7 = vld [vmem:[#allocation4 + $0x60] sm:$0xff]  ;;  %v496_v8 = vld [vmem:[#allocation4 + $0xe8] sm:$0xff]  ;;  %v478_v9 = vld [vmem:[#allocation4 + $0x58] sm:$0xff] }
  0x2b   : > { %435 = vmatpush.msra.mxu2 %v320_v47  ;;  %414 = vmatpush.msra.mxu1 %v353_v50  ;;  %v495_v10 = vld [vmem:[#allocation4 + $0xe0] sm:$0xff]  ;;  %v477_v11 = vld [vmem:[#allocation4 + $0x50] sm:$0xff]  ;;  %v494_v12 = vld [vmem:[#allocation4 + $0xd8] sm:$0xff] }
  0x2c   : > { %455 = vmatpush.msra.mxu3 %v352_v48  ;;  %395 = vmatpush.msra.mxu0 %v319_v49  ;;  %v476_v13 = vld [vmem:[#allocation4 + $0x48] sm:$0xff]  ;;  %v493_v14 = vld [vmem:[#allocation4 + $0xd0] sm:$0xff]  ;;  %v475_v15 = vld [vmem:[#allocation4 + $0x40] sm:$0xff] }
  0x2d   : > { %436 = vmatpush.msra.mxu2 %v318_v51  ;;  %415 = vmatpush.msra.mxu1 %v351_v54  ;;  %v492_v16 = vld [vmem:[#allocation4 + $0xc8] sm:$0xff]  ;;  %v474_v17 = vld [vmem:[#allocation4 + $0x38] sm:$0xff]  ;;  %v491_v18 = vld [vmem:[#allocation4 + $0xc0] sm:$0xff] }
  0x2e   : > { %456 = vmatpush.msra.mxu3 %v350_v52  ;;  %396 = vmatpush.msra.mxu0 %v317_v53  ;;  %v473_v19 = vld [vmem:[#allocation4 + $0x30] sm:$0xff]  ;;  %v490_v20 = vld [vmem:[#allocation4 + $0xb8] sm:$0xff]  ;;  %v472_v21 = vld [vmem:[#allocation4 + $0x28] sm:$0xff] }
  0x2f   : > { %437 = vmatpush.msra.mxu2 %v316_v55  ;;  %416 = vmatpush.msra.mxu1 %v349_v59  ;;  %v489_v22 = vld [vmem:[#allocation4 + $0xb0] sm:$0xff]  ;;  %v471_v23 = vld [vmem:[#allocation4 + $0x20] sm:$0xff]  ;;  %v488_v24 = vld [vmem:[#allocation4 + $0xa8] sm:$0xff] }
  0x30   : > { %457 = vmatpush.msra.mxu3 %v348_v56  ;;  %397 = vmatpush.msra.mxu0 %v315_v58  ;;  %v470_v25 = vld [vmem:[#allocation4 + $0x18] sm:$0xff]  ;;  %v487_v26 = vld [vmem:[#allocation4 + $0xa0] sm:$0xff]  ;;  %v469_v27 = vld [vmem:[#allocation4 + $0x10] sm:$0xff] }
  0x31   : > { %438 = vmatpush.msra.mxu2 %v314_v57  ;;  %417 = vmatpush.msra.mxu1 %v347_v0  ;;  %v486_v28 = vld [vmem:[#allocation4 + $0x98] sm:$0xff]  ;;  %v468_v29 = vld [vmem:[#allocation4 + $0x8] sm:$0xff]  ;;  %v485_v30 = vld [vmem:[#allocation4 + $0x90] sm:$0xff] }
  0x32   : > { %458 = vmatpush.msra.mxu3 %v346_v60  ;;  %439 = vmatmul.f32.vlgmr.msra.gmra.mxu2 %v311_v61  ;;  %v467_v31 = vld [vmem:[#allocation4] sm:$0xff]  ;;  %v484_v32 = vld [vmem:[#allocation4 + $0x88] sm:$0xff]  ;;  %v560_v34 = vld [vmem:[%s954_s5 + $0x78] sm:$0xff] }
  0x33   : > { %459 = vmatmul.f32.vlgmr.msra.gmra.mxu3 %v312_v62  ;;  %398 = vmatpush.msra.mxu0 %v313_v63  ;;  %v483_v33 = vld [vmem:[#allocation4 + $0x80] sm:$0xff]  ;;  %v559_v35 = vld [vmem:[%s954_s5 + $0x70] sm:$0xff]  ;;  %v558_v36 = vld [vmem:[%s954_s5 + $0x68] sm:$0xff] }
  0x34   : > { %399 = vmatmul.f32.vlgmr.msra.gmra.mxu0 %v311_v61  ;;  %418 = vmatpush.msra.mxu1 %v345_v1  ;;  %v557_v37 = vld [vmem:[%s954_s5 + $0x60] sm:$0xff]  ;;  %v556_v38 = vld [vmem:[%s954_s5 + $0x58] sm:$0xff]  ;;  %v555_v40 = vld [vmem:[%s954_s5 + $0x50] sm:$0xff] }
  0x35   : > { %503 = vmatpush.msrb.mxu0 %v482_v2  ;;  %419 = vmatmul.f32.vlgmr.msra.gmra.mxu1 %v312_v62  ;;  %v377_v39 = vld [vmem:[%s951_s2] sm:$0x3]  ;;  %v554_v41 = vld [vmem:[%s954_s5 + $0x48] sm:$0xff]  ;;  %v552_v45 = vld [vmem:[%s954_s5 + $0x38] sm:$0xff] }
  0x36   : > { %523 = vmatpush.msrb.mxu1 %v498_v4  ;;  %565 = vmatpush.msrb.mxu2 %v560_v34  ;;  %v379_v42 = vperm.slane %v377_v39, 0  ;;  %v553_v43 = vld [vmem:[%s954_s5 + $0x40] sm:$0xff]  ;;  %v380_v47 = vperm.slane %v377_v39, 1  ;;  %v551_v58 = vld [vmem:[%s954_s5 + $0x30] sm:$0xff]  ;;  %v550_v59 = vld [vmem:[%s954_s5 + $0x28] sm:$0xff] }
  0x37   : > { %504 = vmatpush.msrb.mxu0 %v481_v3  ;;  %v549_v60 = vld [vmem:[%s954_s5 + $0x20] sm:$0xff]  ;;  %v548_v61 = vld [vmem:[%s954_s5 + $0x18] sm:$0xff]  ;;  %v547_v62 = vld [vmem:[%s954_s5 + $0x10] sm:$0xff] }
  0x38   : > { %524 = vmatpush.msrb.mxu1 %v497_v6  ;;  %566 = vmatpush.msrb.mxu2 %v559_v35  ;;  %v546_v63 = vld [vmem:[%s954_s5 + $0x8] sm:$0xff]  ;;  %v545_v0 = vld [vmem:[%s954_s5] sm:$0xff] }
  0x39   : > { %505 = vmatpush.msrb.mxu0 %v480_v5  ;;  %v710_v1 = vld [vmem:[%s953_s4] ss:$0 sm:$0xff] }
  0x3a   : > { %525 = vmatpush.msrb.mxu1 %v496_v8  ;;  %567 = vmatpush.msrb.mxu2 %v558_v36  ;;  %v711_v8 = vld [vmem:[%s955_s6] ss:$0 sm:$0xff] }
  0x3b   : > { %506 = vmatpush.msrb.mxu0 %v479_v7 }
  0x3c   : > { %526 = vmatpush.msrb.mxu1 %v495_v10  ;;  %568 = vmatpush.msrb.mxu2 %v557_v37 }
  0x3d   : > { %507 = vmatpush.msrb.mxu0 %v478_v9 }
  0x3e   : > { %527 = vmatpush.msrb.mxu1 %v494_v12  ;;  %569 = vmatpush.msrb.mxu2 %v556_v38 }
  0x3f   : > { %508 = vmatpush.msrb.mxu0 %v477_v11 }
  0x40   : > { %528 = vmatpush.msrb.mxu1 %v493_v14  ;;  %570 = vmatpush.msrb.mxu2 %v555_v40 }
  0x41   : > { %509 = vmatpush.msrb.mxu0 %v476_v13 }
  0x42   : > { %529 = vmatpush.msrb.mxu1 %v492_v16  ;;  %571 = vmatpush.msrb.mxu2 %v554_v41 }
  0x43   : > { %510 = vmatpush.msrb.mxu0 %v475_v15 }
  0x44   : > { %530 = vmatpush.msrb.mxu1 %v491_v18  ;;  %572 = vmatpush.msrb.mxu2 %v553_v43 }
  0x45   : > { %511 = vmatpush.msrb.mxu0 %v474_v17 }
  0x46   : > { %531 = vmatpush.msrb.mxu1 %v490_v20  ;;  %573 = vmatpush.msrb.mxu2 %v552_v45 }
  0x47   : > { %512 = vmatpush.msrb.mxu0 %v473_v19 }
  0x48   : > { %532 = vmatpush.msrb.mxu1 %v489_v22  ;;  %574 = vmatpush.msrb.mxu2 %v551_v58 }
  0x49   : > { %513 = vmatpush.msrb.mxu0 %v472_v21 }
  0x4a   : > { %533 = vmatpush.msrb.mxu1 %v488_v24  ;;  %575 = vmatpush.msrb.mxu2 %v550_v59 }
  0x4b   : > { %514 = vmatpush.msrb.mxu0 %v471_v23 }
  0x4c   : > { %534 = vmatpush.msrb.mxu1 %v487_v26  ;;  %576 = vmatpush.msrb.mxu2 %v549_v60 }
  0x4d   : > { %515 = vmatpush.msrb.mxu0 %v470_v25 }
  0x4e   : > { %535 = vmatpush.msrb.mxu1 %v486_v28  ;;  %577 = vmatpush.msrb.mxu2 %v548_v61 }
  0x4f   : > { %516 = vmatpush.msrb.mxu0 %v469_v27 }
  0x50   : > { %536 = vmatpush.msrb.mxu1 %v485_v30  ;;  %578 = vmatpush.msrb.mxu2 %v547_v62 }
  0x51   : > { %517 = vmatpush.msrb.mxu0 %v468_v29 }
  0x52   : > { %537 = vmatpush.msrb.mxu1 %v484_v32  ;;  %579 = vmatpush.msrb.mxu2 %v546_v63 }
  0x53   : > { %518 = vmatpush.msrb.mxu0 %v467_v31 }
  0x54   : > { %538 = vmatpush.msrb.mxu1 %v483_v33  ;;  %580 = vmatpush.msrb.mxu2 %v545_v0 }
  0xb1   : > { %v400_v44 = vpop.f32.mrf.mxu0 }
  0xb2   : > { %v401_v46 = vadd.f32 %v400_v44, %v379_v42  ;;  %v420_v48 = vpop.f32.mrf.mxu1 }
  0xb4   : > { %v421_v49 = vadd.f32 %v420_v48, %v401_v46 }
  0xb5   : > { %v440_v50 = vpop.f32.mrf.mxu2 }
  0xb6   : > { %v460_v51 = vpop.f32.mrf.mxu3  ;;  %712 = vtanh.f32 %v421_v49  ;;  %v441_v52 = vadd.f32 %v440_v50, %v380_v47 }
  0xb8   : > { %v461_v53 = vadd.f32 %v460_v51, %v441_v52 }
  0xba   : > { %714 = vtanh.f32 %v461_v53 }
  0xbc   : > { %v713_v54 = vpop.eup %712 }
  0xbd   : > { %v465_v55 = vmax.f32 %v713_v54, 0.0 }
  0xbf   : > { %519 = vmatmul.f32.vlgmr.msrb.gmra.mxu0 %v465_v55 }
  0xc0   : > { %v715_v56 = vpop.eup %714 }
  0xc1   : > { %v466_v57 = vmax.f32 %v715_v56, 0.0 }
  0xc3   : > { %539 = vmatmul.f32.vlgmr.msrb.gmra.mxu1 %v466_v57 }
 0x13c   : > { %v520_v2 = vpop.f32.mrf.mxu0 }
 0x13d   : > { %v521_v3 = vadd.f32 %v710_v1, %v520_v2 }
 0x140   : > { %v540_v4 = vpop.f32.mrf.mxu1 }
 0x141   : > { %v541_v5 = vadd.f32 %v540_v4, %v521_v3 }
 0x143   : > { %716 = vtanh.f32 %v541_v5 }
 0x149   : > { %v717_v6 = vpop.eup %716 }
 0x14a   : > { %v544_v7 = vmax.f32 %v717_v6, 0.0 }
 0x14c   : > { %581 = vmatmul.f32.vlgmr.msrb.gmra.mxu2 %v544_v7 }
 0x1cf   : > { %v582_v9 = vpop.f32.mrf.mxu2 }
 0x1d0   : > { %v583_v10 = vadd.f32 %v711_v8, %v582_v9 }
 0x1d2   : > { %586 = vst.msk [vmem:[%s310_s21] sm:$0xff] %vm585_vm0, %v583_v10 }
 0x1d3 PF: > { %s19_s24 = sadd.s32 1, %s792_s24  }
 0x1d4   : > { %p16_p7 = scmp.ge.s32.totalorder %s19_s24, 4  }
 0x1d6   :  { %18 = sbr.rel (!%p16_p7) target bundleno = 2 (0x2), region = 87 }
 0x1db   :  { %606 = vsyncpa [#allocation3], 1 }
 0x1dc   :  { %608 = vsyncpa [#allocation3 + $0x1], 1 }
 0x1dd   :  { %609 = vsyncpa [#allocation5], 1 }

</bundles_post_ra>
